<compile_context>
chip_gen: v7x
topology: tpu7x:2x2x1
jax: 0.10.0
libtpu: 0.0.40
codegen_flags: <defaults>
</compile_context>

<pallas_src>
import jax
import jax.numpy as jnp
from jax.experimental import pallas as pl
from jax.experimental.pallas import tpu as pltpu


_LANE = 128                          # TPU lane width (last-dim vreg extent)
_TARGET_BLOCK_BYTES = 4 * 1024 * 1024  # per-operand block target (~4 MiB)


def _sublane_multiple(dtype) -> int:
    """Second-minor tiling multiple for the dtype (8 f32 / 16 bf16 / 32 int8)."""
    return {4: 8, 2: 16, 1: 32}.get(jnp.dtype(dtype).itemsize, 8)


def _copy_kernel(x_ref, o_ref):
    # Lane-tiled path: in/out blocks have identical shapes -> pure full-block
    # vld/vst copy.  Pallas masks the writeback of partial edge blocks, so any
    # chomped / out-of-range columns read into VMEM never reach HBM.
    o_ref[...] = x_ref[...]


def _prefix_kernel(x_ref, o_ref):
    # Tiny-sequence path: input block is wider than the output block; keep only
    # the first l_out columns (static prefix slice resolved at trace time).
    o_ref[...] = x_ref[:, : o_ref.shape[-1]]


def chomp1d(x: jax.Array, chomp_size: int) -> jax.Array:
    """Pallas equivalent of Chomp1d(chomp_size)(x) for x of shape (N, C, L)."""
    if x.ndim != 3:
        raise ValueError(f"expected (N, C, L) input, got shape {x.shape}")
    if chomp_size < 0:
        raise ValueError("chomp_size must be non-negative")
    n, c, l = x.shape

    if chomp_size == 0:
        # Literal PyTorch parity: x[:, :, :-0] == x[:, :, :0] (empty time axis).
        return x[:, :, :0]
    l_out = l - chomp_size
    if l_out <= 0:
        # chomp_size >= L: PyTorch's negative-stop slice also yields empty.
        return x[:, :, :0]

    itemsize = jnp.dtype(x.dtype).itemsize
    sub = _sublane_multiple(x.dtype)
    rows = n * c
    x2 = x.reshape(rows, l)          # free metadata reshape (contiguous NCL)

    # ---- time tile ----------------------------------------------------------
    if l_out >= _LANE:
        # Lane-tiled path: cover the whole output length with as few
        # 128-multiples as the VMEM budget allows (usually a single tile).
        tt_cap = max(_LANE,
                     (_TARGET_BLOCK_BYTES // (sub * itemsize)) // _LANE * _LANE)
        tt_full = pl.cdiv(l_out, _LANE) * _LANE
        tt_in = tt_out = min(tt_full, tt_cap)
        kernel = _copy_kernel
    else:
        # Tiny output length: one full-extent output block; cap the input block
        # at 128 lanes so the chomped tail is (mostly) never read from HBM.
        tt_out = l_out
        tt_in = _LANE if l >= _LANE else l
        kernel = _prefix_kernel
    n_tt = pl.cdiv(l_out, tt_out)

    # ---- row tile (collapsed N*C axis, sublane-aligned) ----------------------
    budget_rows = max(sub, _TARGET_BLOCK_BYTES // (tt_in * itemsize))
    if rows <= budget_rows:
        rt = rows                    # full dim: always a legal block extent
    else:
        rt = max(sub, (budget_rows // sub) * sub)
    n_rt = pl.cdiv(rows, rt)

    # Scoped-VMEM limit: in + out, double-buffered, plus a little slack.
    block_bytes = rt * (tt_in + tt_out) * itemsize
    vmem_limit = int(min(48 << 20, max(16 << 20, 2 * block_bytes + (2 << 20))))

    out2 = pl.pallas_call(
        kernel,
        out_shape=jax.ShapeDtypeStruct((rows, l_out), x.dtype),
        grid_spec=pltpu.PrefetchScalarGridSpec(
            num_scalar_prefetch=0,
            grid=(n_rt, n_tt),
            in_specs=[pl.BlockSpec((rt, tt_in), lambda r, t: (r, t))],
            out_specs=pl.BlockSpec((rt, tt_out), lambda r, t: (r, t)),
        ),
        compiler_params=pltpu.CompilerParams(
            # Every block is an independent copy -> both axes parallel
            # (megacore sharding on v7x; harmless on v5e/v6e).
            dimension_semantics=("parallel", "parallel"),
            vmem_limit_bytes=vmem_limit,
        ),
        cost_estimate=pl.CostEstimate(
            flops=0,
            transcendentals=0,
            bytes_accessed=2 * rows * l_out * itemsize,
        ),
    )(x2)
    return out2.reshape(n, c, l_out)


if __name__ == "__main__":
    key = jax.random.PRNGKey(0)

    # Case 1: tiny shapes (tiny-sequence prefix-slice path), (N, C, L) = (2, 4, 16).
    N, C, L, chomp = 2, 4, 16, 3
    x = jax.random.normal(key, (N, C, L), dtype=jnp.float32)
    out = jax.block_until_ready(chomp1d(x, chomp))
    ref = x[:, :, :-chomp]
    assert out.shape == (N, C, L - chomp), out.shape
    assert out.dtype == x.dtype
    assert jnp.array_equal(out, ref), "Pallas Chomp1d mismatch (tiny case)"

    # Case 2: lane-tiled path with a partially-masked output block (L_out = 379).
    N2, C2, L2, chomp2 = 2, 16, 384, 5
    x2 = jax.random.normal(jax.random.fold_in(key, 1), (N2, C2, L2),
                           dtype=jnp.float32)
    out2 = jax.block_until_ready(chomp1d(x2, chomp2))
    ref2 = x2[:, :, :-chomp2]
    assert out2.shape == (N2, C2, L2 - chomp2), out2.shape
    assert jnp.array_equal(out2, ref2), "Pallas Chomp1d mismatch (lane-tiled case)"

    print("KERNEL_OK")
</pallas_src>

<mosaic_0001>
module attributes {stable_mosaic.version = 11 : i64} {
  func.func @_prefix_kernel(%arg0: i32, %arg1: i32, %arg2: memref<8x16xf32, #tpu.memory_space<vmem>>, %arg3: memref<8x13xf32, #tpu.memory_space<vmem>>) attributes {dimension_semantics = [#tpu.dimension_semantics<parallel>, #tpu.dimension_semantics<parallel>], iteration_bounds = array<i64: 1, 1>, scalar_prefetch = 0 : i64, scratch_operands = 0 : i64, tpu.core_type = #tpu.core_type<tc>, window_params = [{transform_indices = @transform_0, window_bounds = array<i64: 8, 16>}, {transform_indices = @transform_1, window_bounds = array<i64: 8, 13>}]} {
    %c0 = arith.constant 0 : index
    %c0_0 = arith.constant 0 : index
    %0 = vector.load %arg2[%c0, %c0_0] : memref<8x16xf32, #tpu.memory_space<vmem>>, vector<8x13xf32>
    %c0_1 = arith.constant 0 : index
    %c0_2 = arith.constant 0 : index
    %1 = vector.load %arg3[%c0_1, %c0_2] : memref<8x13xf32, #tpu.memory_space<vmem>>, vector<8x13xf32>
    tpu.vector_store %arg3[%c0_1, %c0_2], %0 {strides = array<i32>} : memref<8x13xf32, #tpu.memory_space<vmem>>, vector<8x13xf32>,
    return
  }
  func.func @transform_0(%arg0: i32, %arg1: i32) -> (i32, i32) {
    %c0_i32 = arith.constant 0 : i32
    return %arg0, %arg1 : i32, i32
  }
  func.func @transform_1(%arg0: i32, %arg1: i32) -> (i32, i32) {
    %c0_i32 = arith.constant 0 : i32
    return %arg0, %arg1 : i32, i32
  }
}

</mosaic_0001>

<bundles_post_ra>
// kernel: tpu_custom_call.1
= control target key start
LH: loop header
LB: loop body
LE: loop exit
PB: predicated region body
PF: predicated region fallthrough
CT: control target
= control target key end

     0   :  { %6 = vsyncpa [#allocation3], 0  ;;  %s125_s0 = inlined_call_operand.hbm [shape: f32[8,16], index: 0, kind: input, shape index: {}]   ;;  %s126_s1 = inlined_call_operand.hbm [shape: f32[8,13], index: 1, kind: output, shape index: {}]  }
   0x1   :  { %7 = vsyncpa [#allocation4], 0  ;;  %s89_s6 = smov [#allocation2]   ;;  %s41_s10 = scalar_lea.hbm %s125_s0, 128 }
   0x2   :  { %s14_s7 = sshll.u32 %s89_s6, 4  ;;  %p42_p0 = scmp.ne.s32.totalorder %s125_s0, %s41_s10  ;;  %s15_s7 = int_to_ptr.vmem [resolvable:$true] %s14_s7 }
   0x3   :  { %p45_p1 = scmp.lt.u32.totalorder %s41_s10, %s125_s0 }
   0x5   :  { %p47_p2 = pnand %p45_p1, %p42_p0 }
   0x7   :  { %50 = shalt.err (!%p47_p2)
}
   0x8   :  { %s51_s15 = scalar_lea.vmem %s15_s7, 128  ;;  %p56_p4 = scmp.lt.s32.totalorder %s15_s7, %s15_s7 }
   0x9   :  { %p52_p3 = scmp.ne.s32.totalorder %s15_s7, %s51_s15  ;;  %p57_p5 = scmp.lt.s32.totalorder %s51_s15, %s51_s15 }
   0xb   :  { %p58_p6 = por %p57_p5, %p56_p4 }
   0xd   :  { %p59_p7 = pnand %p58_p6, %p52_p3 }
   0xf   :  { %62 = shalt.err (!%p59_p7)
}
  0x10   :  { %17 = dma.hbm_to_vmem [thread:$0]  %s125_s0, 128, %s15_s7, [#allocation3]  }
  0x11   :  { %85 = dma.done.wait [#allocation3], 128  }
  0x12   :  { %86 = vsyncadd [#allocation3], 4294967168  ;;  %s90_s18 = smov [#allocation5]   ;;  %vm22_vm0 = vcmask 105472   ;;  %v21_v0 = vld [vmem:[#allocation2] sm:$0xff] }
  0x13   :  { %s30_s19 = sshll.u32 %s90_s18, 4  ;;  %23 = vst.msk [vmem:[#allocation5] sm:$0xff] %vm22_vm0, %v21_v0  ;;  %s31_s19 = int_to_ptr.vmem [resolvable:$true] %s30_s19 }
  0x14   :  { %s63_s20 = scalar_lea.vmem %s31_s19, 128  ;;  %p68_p9 = scmp.lt.s32.totalorder %s31_s19, %s31_s19 }
  0x15   :  { %p64_p8 = scmp.ne.s32.totalorder %s31_s19, %s63_s20  ;;  %p69_p10 = scmp.lt.s32.totalorder %s63_s20, %s63_s20 }
  0x17   :  { %p70_p11 = por %p69_p10, %p68_p9 }
  0x19   :  { %p71_p12 = pnand %p70_p11, %p64_p8 }
  0x1b   :  { %74 = shalt.err (!%p71_p12)
}
  0x1c   :  { %s75_s23 = scalar_lea.hbm %s126_s1, 128 }
  0x1d   :  { %p76_p13 = scmp.ne.s32.totalorder %s126_s1, %s75_s23  ;;  %p79_p0 = scmp.lt.u32.totalorder %s75_s23, %s126_s1 }
  0x1f   :  { %p81_p1 = pnand %p79_p0, %p76_p13 }
  0x21   :  { %84 = shalt.err (!%p81_p1)
}
  0x22   :  { %33 = dma.vmem_to_hbm [thread:$0]  %s31_s19, 128, %s126_s1, [#allocation4]  }
  0x23   :  { %87 = dma.done.wait [#allocation4], 128  }
  0x24   :  { %88 = vsyncadd [#allocation4], 4294967168 }
  0x25   :  { %37 = vsyncpa [#allocation3], 1 }
  0x26   :  { %38 = vsyncpa [#allocation4], 1 }

</bundles_post_ra>
